<compile_context>
chip_gen: v7x
topology: tpu7x:2x2x1
jax: 0.10.0
libtpu: 0.0.40
codegen_flags: <defaults>
</compile_context>

<pallas_src>
import math
from functools import partial

import jax
import jax.numpy as jnp
from jax import lax
from jax.experimental import pallas as pl
from jax.experimental.pallas import tpu as pltpu

LANE = 128
SUBLANE = 8


def _round_up(x, m):
    return (x + m - 1) // m * m


def _elu(x):
    # ELU(alpha=1): x if x > 0 else exp(x) - 1
    return jnp.where(x > 0, x, jnp.exp(x) - 1.0)


def _share_network_kernel(x_ref, scale_ref, shift_ref,
                          w1_ref, b1_ref, w2_ref, b2_ref, w3_ref, b3_ref,
                          o_ref, *, normalize_divide):
    x = x_ref[...].astype(jnp.float32)                       # (TILE_N, d_in_p)

    # BatchNorm1d folded into an affine (stats precomputed over the FULL batch in the wrapper).
    xn = x * scale_ref[...] + shift_ref[...]

    md = w1_ref.dtype                                         # matmul operand dtype (bf16)

    h1 = _elu(jnp.dot(xn.astype(md), w1_ref[...],
                      preferred_element_type=jnp.float32) + b1_ref[...])
    h2 = _elu(jnp.dot(h1.astype(md), w2_ref[...],
                      preferred_element_type=jnp.float32) + b2_ref[...])
    h3 = _elu(jnp.dot(h2.astype(md), w3_ref[...],
                      preferred_element_type=jnp.float32) + b3_ref[...])
    # Dropout == identity (eval).  TODO(synk): training-mode dropout mask not reproduced.

    if normalize_divide:
        # h / safe_sqrt(sum(h^2, dim=1)) ; lane reduction -> XLU, rsqrt -> EUP.
        ssq = jnp.sum(h3 * h3, axis=-1, keepdims=True)
        h3 = h3 * lax.rsqrt(jnp.clip(ssq, 1e-9, 1e9))

    o_ref[...] = h3.astype(o_ref.dtype)


def share_network_forward(x, params, *, tile_n=512, matmul_dtype=jnp.bfloat16,
                          use_batchnorm=True, normalize_divide=True):
    """x: (N, input_dim) float32.  Returns (N, base_dim) float32."""
    n, d_in = x.shape
    share_dim = params["w1"].shape[1]
    base_dim = params["w3"].shape[1]

    x32 = x.astype(jnp.float32)

    # ---- BatchNorm1d training-mode statistics over the full (unpadded) batch ----
    if use_batchnorm:
        mean = jnp.mean(x32, axis=0, keepdims=True)
        var = jnp.mean((x32 - mean) ** 2, axis=0, keepdims=True)   # biased var (PyTorch BN fwd)
        scale = params["gamma"] * lax.rsqrt(var + 1e-5)            # (1, d_in)
        shift = params["beta"] - mean * scale                      # (1, d_in)
    else:
        scale = jnp.ones((1, d_in), jnp.float32)
        shift = jnp.zeros((1, d_in), jnp.float32)

    # ---- pad feature dims to the 128-lane width ----
    d_in_p = _round_up(d_in, LANE)
    share_p = _round_up(share_dim, LANE)
    base_p = _round_up(base_dim, LANE)

    def pad2(a, rows, cols):
        return jnp.pad(a, ((0, rows - a.shape[0]), (0, cols - a.shape[1])))

    # ---- pad / tile the batch ----
    tile_n = max(SUBLANE, min(int(tile_n), _round_up(n, SUBLANE)))
    n_p = _round_up(n, tile_n)

    x_p = pad2(x32, n_p, d_in_p)
    scale_p = pad2(scale.astype(jnp.float32), 1, d_in_p)
    shift_p = pad2(shift.astype(jnp.float32), 1, d_in_p)

    w1 = pad2(params["w1"].astype(matmul_dtype), d_in_p, share_p)
    b1 = pad2(params["b1"].astype(jnp.float32), 1, share_p)
    w2 = pad2(params["w2"].astype(matmul_dtype), share_p, share_p)
    b2 = pad2(params["b2"].astype(jnp.float32), 1, share_p)
    w3 = pad2(params["w3"].astype(matmul_dtype), share_p, base_p)
    b3 = pad2(params["b3"].astype(jnp.float32), 1, base_p)

    grid = (n_p // tile_n,)

    def row_spec(shape):
        return pl.BlockSpec(shape, lambda i: (i, 0))

    def const_spec(shape):
        return pl.BlockSpec(shape, lambda i: (0, 0))

    wbytes = jnp.dtype(matmul_dtype).itemsize
    cost = pl.CostEstimate(
        flops=2 * n_p * (d_in_p * share_p + share_p * share_p + share_p * base_p),
        transcendentals=n_p * (2 * share_p + base_p),
        bytes_accessed=(x_p.size * 4 + n_p * base_p * 4
                        + (w1.size + w2.size + w3.size) * wbytes
                        + (b1.size + b2.size + b3.size + scale_p.size + shift_p.size) * 4),
    )

    out_p = pl.pallas_call(
        partial(_share_network_kernel, normalize_divide=normalize_divide),
        out_shape=jax.ShapeDtypeStruct((n_p, base_p), jnp.float32),
        grid=grid,
        in_specs=[
            row_spec((tile_n, d_in_p)),        # x            (tiled over batch)
            const_spec((1, d_in_p)),           # BN scale     (VMEM-resident)
            const_spec((1, d_in_p)),           # BN shift
            const_spec((d_in_p, share_p)),     # w1
            const_spec((1, share_p)),          # b1
            const_spec((share_p, share_p)),    # w2
            const_spec((1, share_p)),          # b2
            const_spec((share_p, base_p)),     # w3
            const_spec((1, base_p)),           # b3
        ],
        out_specs=row_spec((tile_n, base_p)),
        compiler_params=pltpu.CompilerParams(
            dimension_semantics=("parallel",),          # no cross-tile dep after BN hoist
            vmem_limit_bytes=32 * 1024 * 1024,          # safe on v5e/v6e/v7x at tile_n<=512
        ),
        cost_estimate=cost,
    )(x_p, scale_p, shift_p, w1, b1, w2, b2, w3, b3)

    return out_p[:n, :base_dim]


def make_params(key, input_dim, share_dim, base_dim):
    """init_weights: W ~ N(0, 1/sqrt(fan_in)), b = 0.  Weights stored transposed (in, out)
    so the kernel computes x @ W; BN affine is fresh-init gamma=1, beta=0."""
    k1, k2, k3 = jax.random.split(key, 3)
    s1 = 1.0 / math.sqrt(input_dim)
    s2 = 1.0 / math.sqrt(share_dim)
    return {
        "gamma": jnp.ones((1, input_dim), jnp.float32),
        "beta": jnp.zeros((1, input_dim), jnp.float32),
        "w1": s1 * jax.random.normal(k1, (input_dim, share_dim), jnp.float32),
        "b1": jnp.zeros((1, share_dim), jnp.float32),
        "w2": s2 * jax.random.normal(k2, (share_dim, share_dim), jnp.float32),
        "b2": jnp.zeros((1, share_dim), jnp.float32),
        "w3": s2 * jax.random.normal(k3, (share_dim, base_dim), jnp.float32),
        "b3": jnp.zeros((1, base_dim), jnp.float32),
    }


def reference_forward(x, params, *, matmul_dtype=jnp.bfloat16,
                      use_batchnorm=True, normalize_divide=True):
    """Pure-JAX reference (same bf16 matmul operands / f32 accumulation as the kernel)."""
    x = x.astype(jnp.float32)
    if use_batchnorm:
        mean = jnp.mean(x, axis=0, keepdims=True)
        var = jnp.mean((x - mean) ** 2, axis=0, keepdims=True)
        scale = params["gamma"] * lax.rsqrt(var + 1e-5)
        shift = params["beta"] - mean * scale
        xn = x * scale + shift
    else:
        xn = x

    def lin(h, w, b):
        return jnp.dot(h.astype(matmul_dtype), w.astype(matmul_dtype),
                       preferred_element_type=jnp.float32) + b

    h1 = _elu(lin(xn, params["w1"], params["b1"]))
    h2 = _elu(lin(h1, params["w2"], params["b2"]))
    h3 = _elu(lin(h2, params["w3"], params["b3"]))
    if normalize_divide:
        ssq = jnp.sum(h3 * h3, axis=-1, keepdims=True)
        h3 = h3 * lax.rsqrt(jnp.clip(ssq, 1e-9, 1e9))
    return h3


if __name__ == "__main__":
    key = jax.random.PRNGKey(0)
    k_x, k_p = jax.random.split(key)

    batch, input_dim, share_dim, base_dim = 8, 16, 32, 24
    x = jax.random.normal(k_x, (batch, input_dim), jnp.float32)
    params = make_params(k_p, input_dim, share_dim, base_dim)

    out = share_network_forward(x, params)
    out = jax.block_until_ready(out)

    ref = reference_forward(x, params)
    assert out.shape == (batch, base_dim), out.shape
    assert bool(jnp.isfinite(out).all())
    assert jnp.allclose(out, ref, atol=2e-3, rtol=2e-3), (out, ref)

    print("KERNEL_OK")
</pallas_src>

<mosaic_0001>
module attributes {stable_mosaic.version = 11 : i64} {
  func.func @_share_network_kernel(%arg0: i32, %arg1: memref<8x128xf32, #tpu.memory_space<vmem>>, %arg2: memref<1x128xf32, #tpu.memory_space<vmem>>, %arg3: memref<1x128xf32, #tpu.memory_space<vmem>>, %arg4: memref<128x128xbf16, #tpu.memory_space<vmem>>, %arg5: memref<1x128xf32, #tpu.memory_space<vmem>>, %arg6: memref<128x128xbf16, #tpu.memory_space<vmem>>, %arg7: memref<1x128xf32, #tpu.memory_space<vmem>>, %arg8: memref<128x128xbf16, #tpu.memory_space<vmem>>, %arg9: memref<1x128xf32, #tpu.memory_space<vmem>>, %arg10: memref<8x128xf32, #tpu.memory_space<vmem>>) attributes {dimension_semantics = [#tpu.dimension_semantics<parallel>], iteration_bounds = array<i64: 1>, scalar_prefetch = 0 : i64, scratch_operands = 0 : i64, tpu.core_type = #tpu.core_type<tc>, window_params = [{transform_indices = @transform_0, window_bounds = array<i64: 8, 128>}, {pipeline_mode = #tpu.pipeline_mode<synchronous>, transform_indices = @transform_1, window_bounds = array<i64: 1, 128>}, {pipeline_mode = #tpu.pipeline_mode<synchronous>, transform_indices = @transform_2, window_bounds = array<i64: 1, 128>}, {pipeline_mode = #tpu.pipeline_mode<synchronous>, transform_indices = @transform_3, window_bounds = array<i64: 128, 128>}, {pipeline_mode = #tpu.pipeline_mode<synchronous>, transform_indices = @transform_4, window_bounds = array<i64: 1, 128>}, {pipeline_mode = #tpu.pipeline_mode<synchronous>, transform_indices = @transform_5, window_bounds = array<i64: 128, 128>}, {pipeline_mode = #tpu.pipeline_mode<synchronous>, transform_indices = @transform_6, window_bounds = array<i64: 1, 128>}, {pipeline_mode = #tpu.pipeline_mode<synchronous>, transform_indices = @transform_7, window_bounds = array<i64: 128, 128>}, {pipeline_mode = #tpu.pipeline_mode<synchronous>, transform_indices = @transform_8, window_bounds = array<i64: 1, 128>}, {transform_indices = @transform_9, window_bounds = array<i64: 8, 128>}]} {
    %c0 = arith.constant 0 : index
    %c0_0 = arith.constant 0 : index
    %0 = vector.load %arg1[%c0, %c0_0] : memref<8x128xf32, #tpu.memory_space<vmem>>, vector<8x128xf32>
    %c0_1 = arith.constant 0 : index
    %c0_2 = arith.constant 0 : index
    %1 = vector.load %arg2[%c0_1, %c0_2] : memref<1x128xf32, #tpu.memory_space<vmem>>, vector<1x128xf32>
    %2 = vector.broadcast %1 : vector<1x128xf32> to vector<8x128xf32>
    %3 = arith.mulf %0, %2 : vector<8x128xf32>
    %c0_3 = arith.constant 0 : index
    %c0_4 = arith.constant 0 : index
    %4 = vector.load %arg3[%c0_3, %c0_4] : memref<1x128xf32, #tpu.memory_space<vmem>>, vector<1x128xf32>
    %5 = vector.broadcast %4 : vector<1x128xf32> to vector<8x128xf32>
    %6 = arith.addf %3, %5 : vector<8x128xf32>
    %7 = arith.truncf %6 : vector<8x128xf32> to vector<8x128xbf16>
    %c0_5 = arith.constant 0 : index
    %c0_6 = arith.constant 0 : index
    %8 = vector.load %arg4[%c0_5, %c0_6] : memref<128x128xbf16, #tpu.memory_space<vmem>>, vector<128x128xbf16>
    %cst = arith.constant dense<0.000000e+00> : vector<8x128xf32>
    %9 = tpu.matmul %7, %8, %cst {dimension_numbers = #tpu.dot_dimension_numbers<[1], [0], [0], [1], [0, 0, 1, 1], [], []>} : vector<8x128xbf16>, vector<128x128xbf16>, vector<8x128xf32> -> vector<8x128xf32>
    %c0_7 = arith.constant 0 : index
    %c0_8 = arith.constant 0 : index
    %10 = vector.load %arg5[%c0_7, %c0_8] : memref<1x128xf32, #tpu.memory_space<vmem>>, vector<1x128xf32>
    %11 = vector.broadcast %10 : vector<1x128xf32> to vector<8x128xf32>
    %12 = arith.addf %9, %11 : vector<8x128xf32>
    %cst_9 = arith.constant 0.000000e+00 : f32
    %13 = vector.broadcast %cst_9 : f32 to vector<8x128xf32>
    %14 = arith.cmpf ogt, %12, %13 : vector<8x128xf32>
    %15 = math.exp %12 : vector<8x128xf32>
    %cst_10 = arith.constant 1.000000e+00 : f32
    %16 = vector.broadcast %cst_10 : f32 to vector<8x128xf32>
    %17 = arith.subf %15, %16 : vector<8x128xf32>
    %18 = arith.select %14, %12, %17 : vector<8x128xi1>, vector<8x128xf32>
    %19 = arith.truncf %18 : vector<8x128xf32> to vector<8x128xbf16>
    %c0_11 = arith.constant 0 : index
    %c0_12 = arith.constant 0 : index
    %20 = vector.load %arg6[%c0_11, %c0_12] : memref<128x128xbf16, #tpu.memory_space<vmem>>, vector<128x128xbf16>
    %cst_13 = arith.constant dense<0.000000e+00> : vector<8x128xf32>
    %21 = tpu.matmul %19, %20, %cst_13 {dimension_numbers = #tpu.dot_dimension_numbers<[1], [0], [0], [1], [0, 0, 1, 1], [], []>} : vector<8x128xbf16>, vector<128x128xbf16>, vector<8x128xf32> -> vector<8x128xf32>
    %c0_14 = arith.constant 0 : index
    %c0_15 = arith.constant 0 : index
    %22 = vector.load %arg7[%c0_14, %c0_15] : memref<1x128xf32, #tpu.memory_space<vmem>>, vector<1x128xf32>
    %23 = vector.broadcast %22 : vector<1x128xf32> to vector<8x128xf32>
    %24 = arith.addf %21, %23 : vector<8x128xf32>
    %cst_16 = arith.constant 0.000000e+00 : f32
    %25 = vector.broadcast %cst_16 : f32 to vector<8x128xf32>
    %26 = arith.cmpf ogt, %24, %25 : vector<8x128xf32>
    %27 = math.exp %24 : vector<8x128xf32>
    %cst_17 = arith.constant 1.000000e+00 : f32
    %28 = vector.broadcast %cst_17 : f32 to vector<8x128xf32>
    %29 = arith.subf %27, %28 : vector<8x128xf32>
    %30 = arith.select %26, %24, %29 : vector<8x128xi1>, vector<8x128xf32>
    %31 = arith.truncf %30 : vector<8x128xf32> to vector<8x128xbf16>
    %c0_18 = arith.constant 0 : index
    %c0_19 = arith.constant 0 : index
    %32 = vector.load %arg8[%c0_18, %c0_19] : memref<128x128xbf16, #tpu.memory_space<vmem>>, vector<128x128xbf16>
    %cst_20 = arith.constant dense<0.000000e+00> : vector<8x128xf32>
    %33 = tpu.matmul %31, %32, %cst_20 {dimension_numbers = #tpu.dot_dimension_numbers<[1], [0], [0], [1], [0, 0, 1, 1], [], []>} : vector<8x128xbf16>, vector<128x128xbf16>, vector<8x128xf32> -> vector<8x128xf32>
    %c0_21 = arith.constant 0 : index
    %c0_22 = arith.constant 0 : index
    %34 = vector.load %arg9[%c0_21, %c0_22] : memref<1x128xf32, #tpu.memory_space<vmem>>, vector<1x128xf32>
    %35 = vector.broadcast %34 : vector<1x128xf32> to vector<8x128xf32>
    %36 = arith.addf %33, %35 : vector<8x128xf32>
    %cst_23 = arith.constant 0.000000e+00 : f32
    %37 = vector.broadcast %cst_23 : f32 to vector<8x128xf32>
    %38 = arith.cmpf ogt, %36, %37 : vector<8x128xf32>
    %39 = math.exp %36 : vector<8x128xf32>
    %cst_24 = arith.constant 1.000000e+00 : f32
    %40 = vector.broadcast %cst_24 : f32 to vector<8x128xf32>
    %41 = arith.subf %39, %40 : vector<8x128xf32>
    %42 = arith.select %38, %36, %41 : vector<8x128xi1>, vector<8x128xf32>
    %43 = arith.mulf %42, %42 : vector<8x128xf32>
    %cst_25 = arith.constant dense<0.000000e+00> : vector<8xf32>
    %44 = vector.multi_reduction <add>, %43, %cst_25 [1] : vector<8x128xf32> to vector<8xf32>
    %45 = vector.shape_cast %44 : vector<8xf32> to vector<8x1xf32>
    %cst_26 = arith.constant 9.99999971E-10 : f32
    %cst_27 = arith.constant 1.000000e+09 : f32
    %46 = vector.broadcast %cst_26 : f32 to vector<8x1xf32>
    %47 = arith.maximumf %46, %45 : vector<8x1xf32>
    %48 = vector.broadcast %cst_27 : f32 to vector<8x1xf32>
    %49 = arith.minimumf %48, %47 : vector<8x1xf32>
    %50 = math.rsqrt %49 : vector<8x1xf32>
    %51 = vector.broadcast %50 : vector<8x1xf32> to vector<8x128xf32>
    %52 = arith.mulf %42, %51 : vector<8x128xf32>
    %c0_28 = arith.constant 0 : index
    %c0_29 = arith.constant 0 : index
    %53 = vector.load %arg10[%c0_28, %c0_29] : memref<8x128xf32, #tpu.memory_space<vmem>>, vector<8x128xf32>
    tpu.vector_store %arg10[%c0_28, %c0_29], %52 {strides = array<i32>} : memref<8x128xf32, #tpu.memory_space<vmem>>, vector<8x128xf32>,
    return
  }
  func.func @transform_0(%arg0: i32) -> (i32, i32) {
    %c0_i32 = arith.constant 0 : i32
    %c0_i32_0 = arith.constant 0 : i32
    return %arg0, %c0_i32 : i32, i32
  }
  func.func @transform_1(%arg0: i32) -> (i32, i32) {
    %c0_i32 = arith.constant 0 : i32
    %c0_i32_0 = arith.constant 0 : i32
    %c0_i32_1 = arith.constant 0 : i32
    return %c0_i32, %c0_i32_0 : i32, i32
  }
  func.func @transform_2(%arg0: i32) -> (i32, i32) {
    %c0_i32 = arith.constant 0 : i32
    %c0_i32_0 = arith.constant 0 : i32
    %c0_i32_1 = arith.constant 0 : i32
    return %c0_i32, %c0_i32_0 : i32, i32
  }
  func.func @transform_3(%arg0: i32) -> (i32, i32) {
    %c0_i32 = arith.constant 0 : i32
    %c0_i32_0 = arith.constant 0 : i32
    %c0_i32_1 = arith.constant 0 : i32
    return %c0_i32, %c0_i32_0 : i32, i32
  }
  func.func @transform_4(%arg0: i32) -> (i32, i32) {
    %c0_i32 = arith.constant 0 : i32
    %c0_i32_0 = arith.constant 0 : i32
    %c0_i32_1 = arith.constant 0 : i32
    return %c0_i32, %c0_i32_0 : i32, i32
  }
  func.func @transform_5(%arg0: i32) -> (i32, i32) {
    %c0_i32 = arith.constant 0 : i32
    %c0_i32_0 = arith.constant 0 : i32
    %c0_i32_1 = arith.constant 0 : i32
    return %c0_i32, %c0_i32_0 : i32, i32
  }
  func.func @transform_6(%arg0: i32) -> (i32, i32) {
    %c0_i32 = arith.constant 0 : i32
    %c0_i32_0 = arith.constant 0 : i32
    %c0_i32_1 = arith.constant 0 : i32
    return %c0_i32, %c0_i32_0 : i32, i32
  }
  func.func @transform_7(%arg0: i32) -> (i32, i32) {
    %c0_i32 = arith.constant 0 : i32
    %c0_i32_0 = arith.constant 0 : i32
    %c0_i32_1 = arith.constant 0 : i32
    return %c0_i32, %c0_i32_0 : i32, i32
  }
  func.func @transform_8(%arg0: i32) -> (i32, i32) {
    %c0_i32 = arith.constant 0 : i32
    %c0_i32_0 = arith.constant 0 : i32
    %c0_i32_1 = arith.constant 0 : i32
    return %c0_i32, %c0_i32_0 : i32, i32
  }
  func.func @transform_9(%arg0: i32) -> (i32, i32) {
    %c0_i32 = arith.constant 0 : i32
    %c0_i32_0 = arith.constant 0 : i32
    return %arg0, %c0_i32 : i32, i32
  }
}

</mosaic_0001>

<bundles_post_ra>
// kernel: tpu_custom_call.1
= control target key start
LH: loop header
LB: loop body
LE: loop exit
PB: predicated region body
PF: predicated region fallthrough
CT: control target
= control target key end

     0   :  { %14 = vsyncpa [#allocation3], 0  ;;  %s931_s0 = inlined_call_operand.hbm [shape: f32[8,128], index: 0, kind: input, shape index: {}]   ;;  %s932_s1 = inlined_call_operand.vmem [shape: f32[1,128], index: 1, kind: input, shape index: {}]   ;;  %s933_s2 = inlined_call_operand.vmem [shape: f32[1,128], index: 2, kind: input, shape index: {}]   ;;  %s934_s3 = inlined_call_operand.hbm [shape: bf16[128,128], index: 3, kind: input, shape index: {}]   ;;  %s935_s4 = inlined_call_operand.vmem [shape: f32[1,128], index: 4, kind: input, shape index: {}]   ;;  %s936_s5 = inlined_call_operand.hbm [shape: bf16[128,128], index: 5, kind: input, shape index: {}]   ;;  %s937_s6 = inlined_call_operand.vmem [shape: f32[1,128], index: 6, kind: input, shape index: {}]   ;;  %s938_s7 = inlined_call_operand.hbm [shape: bf16[128,128], index: 7, kind: input, shape index: {}]   ;;  %s939_s8 = inlined_call_operand.vmem [shape: f32[1,128], index: 8, kind: input, shape index: {}]   ;;  %s940_s9 = inlined_call_operand.hbm [shape: f32[8,128], index: 9, kind: output, shape index: {}]  }
   0x1   :  { %15 = vsyncpa [#allocation6], 0 }
   0x2   :  { %16 = vsyncpa [#allocation9], 0 }
   0x3   :  { %17 = vsyncpa [#allocation4], 0  ;;  %s758_s30 = smov [#allocation5]   ;;  %s640_s13 = scalar_lea.hbm %s934_s3, 1024 }
   0x4   :  { %s37_s10 = sshll.u32 %s758_s30, 4  ;;  %p641_p0 = scmp.ne.s32.totalorder %s934_s3, %s640_s13  ;;  %s38_s10 = int_to_ptr.vmem [resolvable:$true] %s37_s10 }
   0x5   :  { %p644_p1 = scmp.lt.u32.totalorder %s640_s13, %s934_s3 }
   0x7   :  { %p646_p2 = pnand %p644_p1, %p641_p0 }
   0x9   :  { %649 = shalt.err (!%p646_p2)
}
   0xa   :  { %s650_s18 = scalar_lea.vmem %s38_s10, 1024  ;;  %p655_p4 = scmp.lt.s32.totalorder %s38_s10, %s38_s10 }
   0xb   :  { %p651_p3 = scmp.ne.s32.totalorder %s38_s10, %s650_s18  ;;  %p656_p5 = scmp.lt.s32.totalorder %s650_s18, %s650_s18 }
   0xd   :  { %p657_p6 = por %p656_p5, %p655_p4 }
   0xf   :  { %p658_p7 = pnand %p657_p6, %p651_p3 }
  0x11   :  { %661 = shalt.err (!%p658_p7)
}
  0x12   :  { %s759_s19 = smov 64   ;;  %s760_s20 = smov 4  }
  0x13   :  { %43 = dma.hbm_to_vmem [thread:$0]  %s934_s3, 1024, %s38_s10, [#allocation6], %s759_s19, %s759_s19, %s760_s20  }
  0x14   :  { %s761_s23 = smov [#allocation2]   ;;  %s762_s25 = smov [#allocation7]  }
  0x15   :  { %s24_s24 = sshll.u32 %s761_s23, 4  ;;  %s51_s26 = sshll.u32 %s762_s25, 4  ;;  %s25_s24 = int_to_ptr.vmem [resolvable:$true] %s24_s24  ;;  %s52_s26 = int_to_ptr.vmem [resolvable:$true] %s51_s26 }
  0x16   :  { %s662_s29 = scalar_lea.hbm %s931_s0, 128 }
  0x17   :  { %p663_p8 = scmp.ne.s32.totalorder %s931_s0, %s662_s29  ;;  %p666_p9 = scmp.lt.u32.totalorder %s662_s29, %s931_s0 }
  0x19   :  { %p668_p10 = pnand %p666_p9, %p663_p8 }
  0x1b   :  { %671 = shalt.err (!%p668_p10)
}
  0x1c   :  { %s672_s3 = scalar_lea.vmem %s25_s24, 128  ;;  %p677_p12 = scmp.lt.s32.totalorder %s25_s24, %s25_s24 }
  0x1d   :  { %p673_p11 = scmp.ne.s32.totalorder %s25_s24, %s672_s3  ;;  %p678_p13 = scmp.lt.s32.totalorder %s672_s3, %s672_s3 }
  0x1f   :  { %p679_p0 = por %p678_p13, %p677_p12 }
  0x21   :  { %p680_p1 = pnand %p679_p0, %p673_p11 }
  0x23   :  { %683 = shalt.err (!%p680_p1)
}
  0x24   :  { %27 = dma.hbm_to_vmem [thread:$0]  %s931_s0, 128, %s25_s24, [#allocation3]  }
  0x25   :  { %s684_s17 = scalar_lea.hbm %s936_s5, 1024 }
  0x26   :  { %p685_p2 = scmp.ne.s32.totalorder %s936_s5, %s684_s17  ;;  %p688_p3 = scmp.lt.u32.totalorder %s684_s17, %s936_s5 }
  0x28   :  { %p690_p4 = pnand %p688_p3, %p685_p2 }
  0x2a   :  { %693 = shalt.err (!%p690_p4)
}
  0x2b   :  { %s694_s25 = scalar_lea.vmem %s52_s26, 1024  ;;  %p699_p6 = scmp.lt.s32.totalorder %s52_s26, %s52_s26 }
  0x2c   :  { %p695_p5 = scmp.ne.s32.totalorder %s52_s26, %s694_s25  ;;  %p700_p7 = scmp.lt.s32.totalorder %s694_s25, %s694_s25 }
  0x2e   :  { %p701_p8 = por %p700_p7, %p699_p6 }
  0x30   :  { %p702_p9 = pnand %p701_p8, %p695_p5 }
  0x32   :  { %705 = shalt.err (!%p702_p9)
}
  0x33   :  { %57 = dma.hbm_to_vmem [thread:$0]  %s936_s5, 1024, %s52_s26, [#allocation6], %s759_s19, %s759_s19, %s760_s20  }
  0x34   :  { %s763_s27 = smov [#allocation8]   ;;  %s706_s11 = scalar_lea.hbm %s938_s7, 1024 }
  0x35   :  { %s65_s28 = sshll.u32 %s763_s27, 4  ;;  %p707_p10 = scmp.ne.s32.totalorder %s938_s7, %s706_s11  ;;  %s66_s28 = int_to_ptr.vmem [resolvable:$true] %s65_s28 }
  0x36   :  { %p710_p11 = scmp.lt.u32.totalorder %s706_s11, %s938_s7 }
  0x38   :  { %p712_p12 = pnand %p710_p11, %p707_p10 }
  0x3a   :  { %715 = shalt.err (!%p712_p12)
}
  0x3b   :  { %s716_s14 = scalar_lea.vmem %s66_s28, 1024  ;;  %p721_p0 = scmp.lt.s32.totalorder %s66_s28, %s66_s28 }
  0x3c   :  { %p717_p13 = scmp.ne.s32.totalorder %s66_s28, %s716_s14  ;;  %p722_p1 = scmp.lt.s32.totalorder %s716_s14, %s716_s14 }
  0x3e   :  { %p723_p2 = por %p722_p1, %p721_p0 }
  0x40   :  { %p724_p3 = pnand %p723_p2, %p717_p13 }
  0x42   :  { %727 = shalt.err (!%p724_p3)
}
  0x43   :  { %71 = dma.hbm_to_vmem [thread:$0]  %s938_s7, 1024, %s66_s28, [#allocation9], %s759_s19, %s759_s19, %s760_s20  }
  0x44   :  { %750 = dma.done.wait [#allocation3], 128  }
  0x45   :  { %751 = vsyncadd [#allocation3], 4294967168 }
  0x46   :  { %752 = dma.done.wait [#allocation6], 2048  }
  0x47   :  { %753 = vsyncadd [#allocation6], 4294965248 }
  0x48   :  { %754 = dma.done.wait [#allocation9], 1024  }
  0x49   :  { %755 = vsyncadd [#allocation9], 4294966272  ;;  %v764_v0 = vmov 0.0   ;;  %vm765_vm0 = vmmov 0   ;;  %v608_v1 = vld [vmem:[#allocation5] sm:$0xff]   ;;  %v609_v2 = vld [vmem:[#allocation5 + $0x8] sm:$0xff]  }
  0x4a   :  { %539 = vmatprep.subr.bf16.mxu0 %v764_v0  ;;  %555 = vmatprep.mubr.msk.bf16.mxu0 %vm765_vm0, %v764_v0  ;;  %v610_v3 = vld [vmem:[#allocation5 + $0x10] sm:$0xff]   ;;  %v616_v4 = vld [vmem:[#allocation7] sm:$0xff]   ;;  %v611_v5 = vld [vmem:[#allocation5 + $0x18] sm:$0xff]  }
  0x4b   :  { %559 = vmatprep.subr.bf16.mxu1 %v764_v0  ;;  %575 = vmatprep.mubr.msk.bf16.mxu1 %vm765_vm0, %v764_v0  ;;  %v617_v6 = vld [vmem:[#allocation7 + $0x8] sm:$0xff]   ;;  %v612_v7 = vld [vmem:[#allocation5 + $0x20] sm:$0xff]   ;;  %v618_v8 = vld [vmem:[#allocation7 + $0x10] sm:$0xff]  }
  0x4c   :  { %540 = vmatpush3.bf16.msra.mxu0 %v608_v1  ;;  %560 = vmatpush3.bf16.msra.mxu1 %v616_v4  ;;  %v613_v9 = vld [vmem:[#allocation5 + $0x28] sm:$0xff]   ;;  %v87_v10 = vld [vmem:[#allocation2] sm:$0xff]  ;;  %v614_v13 = vld [vmem:[#allocation5 + $0x30] sm:$0xff]  }
  0x4d   :  { %541 = vmatprep.subr.bf16.mxu0 %v764_v0  ;;  %561 = vmatprep.subr.bf16.mxu1 %v764_v0  ;;  %v480_v11 = vld [vmem:[%s932_s1] ss:$0 sm:$0xff]  ;;  %v620_v19 = vld [vmem:[#allocation7 + $0x20] sm:$0xff]   ;;  %v621_v20 = vld [vmem:[#allocation7 + $0x28] sm:$0xff]  }
  0x4e   :  { %v95_v12 = vmul.f32 %v480_v11, %v87_v10  ;;  %v481_v14 = vld [vmem:[%s933_s2] ss:$0 sm:$0xff]  ;;  %v622_v21 = vld [vmem:[#allocation7 + $0x30] sm:$0xff]   ;;  %v624_v23 = vld [vmem:[#allocation8] sm:$0xff]  }
  0x4f   :  { %v615_v16 = vld [vmem:[#allocation5 + $0x38] sm:$0xff]   ;;  %v625_v24 = vld [vmem:[#allocation8 + $0x8] sm:$0xff]   ;;  %v626_v25 = vld [vmem:[#allocation8 + $0x10] sm:$0xff]  }
  0x50   :  { %542 = vmatpush3.bf16.msra.mxu0 %v609_v2  ;;  %562 = vmatpush3.bf16.msra.mxu1 %v617_v6  ;;  %v103_v15 = vadd.f32 %v481_v14, %v95_v12  ;;  %v619_v18 = vld [vmem:[#allocation7 + $0x18] sm:$0xff]   ;;  %v628_v38 = vld [vmem:[#allocation8 + $0x20] sm:$0xff]   ;;  %v629_v39 = vld [vmem:[#allocation8 + $0x28] sm:$0xff]  }
  0x51   :  { %543 = vmatprep.subr.bf16.mxu0 %v764_v0  ;;  %563 = vmatprep.subr.bf16.mxu1 %v764_v0  ;;  %v623_v22 = vld [vmem:[#allocation7 + $0x38] sm:$0xff]   ;;  %v630_v40 = vld [vmem:[#allocation8 + $0x30] sm:$0xff]  }
  0x52   :  { %v104_v17 = vpack.c.bf16 %v103_v15, %v103_v15  ;;  %v482_v26 = vld [vmem:[%s935_s4] ss:$0 sm:$0xff] }
  0x53   :  { %v627_v37 = vld [vmem:[#allocation8 + $0x18] sm:$0xff]  }
  0x54   :  { %544 = vmatpush3.bf16.msra.mxu0 %v610_v3  ;;  %564 = vmatpush3.bf16.msra.mxu1 %v618_v8  ;;  %v631_v41 = vld [vmem:[#allocation8 + $0x38] sm:$0xff]  }
  0x55   :  { %545 = vmatprep.subr.bf16.mxu0 %v764_v0  ;;  %565 = vmatprep.subr.bf16.mxu1 %v764_v0  ;;  %v492_v42 = vld [vmem:[%s937_s6] ss:$0 sm:$0xff]  ;;  %s766_s6 = smov [#allocation10]  }
  0x56   :  { %v502_v53 = vld [vmem:[%s939_s8] ss:$0 sm:$0xff]  ;;  %s469_s21 = sshll.u32 %s766_s6, 4  ;;  %s470_s21 = int_to_ptr.vmem [resolvable:$true] %s469_s21 }
  0x57   :  { %s728_s8 = scalar_lea.vmem %s470_s21, 128  ;;  %p733_p5 = scmp.lt.s32.totalorder %s470_s21, %s470_s21 }
  0x58   :  { %546 = vmatpush3.bf16.msra.mxu0 %v611_v5  ;;  %566 = vmatpush3.bf16.msra.mxu1 %v619_v18  ;;  %p729_p4 = scmp.ne.s32.totalorder %s470_s21, %s728_s8  ;;  %p734_p6 = scmp.lt.s32.totalorder %s728_s8, %s728_s8 }
  0x59   :  { %547 = vmatprep.subr.bf16.mxu0 %v764_v0  ;;  %567 = vmatprep.subr.bf16.mxu1 %v764_v0 }
  0x5a   :  { %p735_p7 = por %p734_p6, %p733_p5 }
  0x5c   :  { %548 = vmatpush3.bf16.msra.mxu0 %v612_v7  ;;  %568 = vmatpush3.bf16.msra.mxu1 %v620_v19  ;;  %p736_p8 = pnand %p735_p7, %p729_p4 }
  0x5d   :  { %549 = vmatprep.subr.bf16.mxu0 %v764_v0  ;;  %569 = vmatprep.subr.bf16.mxu1 %v764_v0 }
  0x60   :  { %550 = vmatpush3.bf16.msra.mxu0 %v613_v9  ;;  %570 = vmatpush3.bf16.msra.mxu1 %v621_v20 }
  0x61   :  { %551 = vmatprep.subr.bf16.mxu0 %v764_v0  ;;  %571 = vmatprep.subr.bf16.mxu1 %v764_v0 }
  0x64   :  { %552 = vmatpush3.bf16.msra.mxu0 %v614_v13  ;;  %572 = vmatpush3.bf16.msra.mxu1 %v622_v21 }
  0x65   :  { %553 = vmatprep.subr.bf16.mxu0 %v764_v0  ;;  %573 = vmatprep.subr.bf16.mxu1 %v764_v0 }
  0x68   :  { %554 = vmatpush3.bf16.msra.mxu0 %v615_v16  ;;  %574 = vmatpush3.bf16.msra.mxu1 %v623_v22 }
  0x69   :  { %579 = vmatprep.subr.bf16.mxu0 %v764_v0 }
  0x6b   :  { %556 = vmatmul.mubr.bf16.vlgmr.msra.gmra.mrb[0].mxu0 %v104_v17 }
  0x6c   :  { %595 = vmatprep.mubr.msk.bf16.mxu0 %vm765_vm0, %v764_v0  ;;  %580 = vmatpush3.bf16.msra.mxu0 %v624_v23 }
  0x6d   :  { %581 = vmatprep.subr.bf16.mxu0 %v764_v0 }
  0x70   :  { %582 = vmatpush3.bf16.msra.mxu0 %v625_v24 }
  0x71   :  { %583 = vmatprep.subr.bf16.mxu0 %v764_v0 }
  0x74   :  { %584 = vmatpush3.bf16.msra.mxu0 %v626_v25 }
  0x75   :  { %585 = vmatprep.subr.bf16.mxu0 %v764_v0 }
  0x78   :  { %586 = vmatpush3.bf16.msra.mxu0 %v627_v37 }
  0x79   :  { %587 = vmatprep.subr.bf16.mxu0 %v764_v0 }
  0x7c   :  { %588 = vmatpush3.bf16.msra.mxu0 %v628_v38 }
  0x7d   :  { %589 = vmatprep.subr.bf16.mxu0 %v764_v0 }
  0x80   :  { %590 = vmatpush3.bf16.msra.mxu0 %v629_v39 }
  0x81   :  { %591 = vmatprep.subr.bf16.mxu0 %v764_v0 }
  0x84   :  { %592 = vmatpush3.bf16.msra.mxu0 %v630_v40 }
  0x85   :  { %593 = vmatprep.subr.bf16.mxu0 %v764_v0 }
  0x88   :  { %594 = vmatpush3.bf16.msra.mxu0 %v631_v41 }
 0x13e   :  { %v210_v27 = vpop.f32.mrb[0].mxu0 }
 0x13f   :  { %v211_v28 = vadd.f32 %v482_v26, %v210_v27  ;;  %v557_v29 = vpop.f32.mrb[1].mxu0 }
 0x140   :  { %v213_v30 = vpop.f32.mrb[2].mxu0 }
 0x141   :  { %v217_v31 = vmul.f32 1.442695, %v211_v28  ;;  %v558_v32 = vpop.f32.mrb[3].mxu0  ;;  %vm216_vm1 = vcmp.gt.f32.partialorder %v211_v28, 0.0 }
 0x143   :  { %632 = vpow2.f32 %v217_v31 }
 0x14d   :  { %v633_v33 = vpop.eup %632 }
 0x14e   :  { %v491_v34 = vadd.f32 -1.0, %v633_v33 }
 0x150   :  { %v220_v35 = vsel %vm216_vm1, %v211_v28, %v491_v34 }
 0x151   :  { %v221_v36 = vpack.c.bf16 %v220_v35, %v220_v35 }
 0x153   :  { %576 = vmatmul.mubr.bf16.vlgmr.msra.gmra.mrb[0].mxu1 %v221_v36 }
 0x226   :  { %v327_v43 = vpop.f32.mrb[0].mxu1 }
 0x227   :  { %v328_v44 = vadd.f32 %v492_v42, %v327_v43  ;;  %v577_v45 = vpop.f32.mrb[1].mxu1 }
 0x228   :  { %v330_v46 = vpop.f32.mrb[2].mxu1 }
 0x229   :  { %v334_v47 = vmul.f32 1.442695, %v328_v44  ;;  %v578_v48 = vpop.f32.mrb[3].mxu1  ;;  %vm333_vm2 = vcmp.gt.f32.partialorder %v328_v44, 0.0 }
 0x22b   :  { %634 = vpow2.f32 %v334_v47 }
 0x235   :  { %v635_v49 = vpop.eup %634 }
 0x236   :  { %v501_v50 = vadd.f32 -1.0, %v635_v49 }
 0x238   :  { %v337_v51 = vsel %vm333_vm2, %v328_v44, %v501_v50 }
 0x239   :  { %v338_v52 = vpack.c.bf16 %v337_v51, %v337_v51 }
 0x23b   :  { %596 = vmatmul.mubr.bf16.vlgmr.msra.gmra.mrb[4].mxu0 %v338_v52 }
 0x30e   :  { %v444_v54 = vpop.f32.mrb[4].mxu0 }
 0x30f   :  { %v445_v55 = vadd.f32 %v502_v53, %v444_v54  ;;  %v597_v56 = vpop.f32.mrb[5].mxu0 }
 0x310   :  { %v447_v57 = vpop.f32.mrb[6].mxu0 }
 0x311   :  { %v451_v58 = vmul.f32 1.442695, %v445_v55  ;;  %v598_v59 = vpop.f32.mrb[7].mxu0  ;;  %vm450_vm3 = vcmp.gt.f32.partialorder %v445_v55, 0.0 }
 0x313   :  { %636 = vpow2.f32 %v451_v58 }
 0x31d   :  { %v637_v60 = vpop.eup %636 }
 0x31e   :  { %v511_v61 = vadd.f32 -1.0, %v637_v60 }
 0x320   :  { %v454_v62 = vsel %vm450_vm3, %v445_v55, %v511_v61 }
 0x321   :  { %v455_v63 = vmul.f32 %v454_v62, %v454_v62 }
 0x323   :  { %456 = vadd.xlane.f32.xlu0 %v455_v63 }
 0x3b0   :  { %v457_v0 = vpop.xlane.xlu0 %456 }
 0x3b1   :  { %v458_v1 = vmax.f32 %v457_v0, 1e-09 }
 0x3b3   :  { %v459_v2 = vmin.f32 %v458_v1, 1e+09 }
 0x3b5   :  { %638 = vrsqrt.f32 %v459_v2 }
 0x3bf   :  { %v639_v3 = vpop.eup %638 }
 0x3c0   :  { %v461_v4 = vmul.f32 %v639_v3, %v454_v62 }
 0x3c2   :  { %462 = vst [vmem:[#allocation10] sm:$0xff] %v461_v4 }
 0x3c3   :  { %739 = shalt.err (!%p736_p8)
}
 0x3c4   :  { %s740_s25 = scalar_lea.hbm %s940_s9, 128 }
 0x3c5   :  { %p741_p9 = scmp.ne.s32.totalorder %s940_s9, %s740_s25  ;;  %p744_p10 = scmp.lt.u32.totalorder %s740_s25, %s940_s9 }
 0x3c7   :  { %p746_p11 = pnand %p744_p10, %p741_p9 }
 0x3c9   :  { %749 = shalt.err (!%p746_p11)
}
 0x3ca   :  { %472 = dma.vmem_to_hbm [thread:$0]  %s470_s21, 128, %s940_s9, [#allocation4]  }
 0x3cb   :  { %756 = dma.done.wait [#allocation4], 128  }
 0x3cc   :  { %757 = vsyncadd [#allocation4], 4294967168 }
 0x3cd   :  { %476 = vsyncpa [#allocation3], 1 }
 0x3ce   :  { %477 = vsyncpa [#allocation6], 1 }
 0x3cf   :  { %478 = vsyncpa [#allocation9], 1 }
 0x3d0   :  { %479 = vsyncpa [#allocation4], 1 }

</bundles_post_ra>
